<compile_context>
chip_gen: v7x
topology: tpu7x:2x2x1
jax: 0.10.0
libtpu: 0.0.40
codegen_flags: <defaults>
</compile_context>

<pallas_src>
import functools
import numpy as np
import jax
import jax.numpy as jnp
from jax.experimental import pallas as pl
from jax.experimental.pallas import tpu as pltpu

_L2_EPS = 1e-12   # F.normalize default eps
_BN_EPS = 1e-5    # nn.BatchNorm1d default eps
_LANE = 128

_VMEM = pl.BlockSpec(memory_space=pltpu.MemorySpace.VMEM)


# ------------------------------- helpers -------------------------------------

def _round_up(x, m):
    return ((x + m - 1) // m) * m


def _pad2(x, rows, cols):
    r, c = x.shape
    return jnp.pad(x, ((0, rows - r), (0, cols - c)))


def _pick_row_tile(n, target):
    """Largest multiple-of-8 divisor of n that is <= target (else the full n)."""
    best = n
    for t in range(8, min(target, n) + 1, 8):
        if n % t == 0:
            best = t
    return best


# ----------------------------- Pallas kernels --------------------------------

def _embed_kernel(x_ref, w_ref, b_ref, out_ref):
    """embedding_h: row tile of nodes_feat @ W_emb + b (bf16 MXU, f32 accumulate)."""
    y = jnp.dot(x_ref[...].astype(jnp.bfloat16), w_ref[...],
                preferred_element_type=jnp.float32) + b_ref[...]
    out_ref[...] = y.astype(out_ref.dtype)


def _sage_pass1_kernel(adjn_ref, hall_ref, hrow_ref, w_self_ref, w_agg_ref,
                       b_ref, gamma_ref, beta_ref,
                       z_ref, scale_ref, shift_ref, *, n_nodes):
    """Pass 1 of a GraphSage 'meanpool' layer (row-tiled over destination nodes):
       mean-aggregate -> linear -> l2norm -> relu, plus BN-statistics accumulation.
       On the last tile, scale/shift outputs are finalized to the affine BN params."""
    i = pl.program_id(0)
    last = pl.num_programs(0) - 1

    # mean aggregation over in-neighbours (adjacency rows pre-normalized by 1/deg)
    agg = jnp.dot(adjn_ref[...], hall_ref[...],
                  preferred_element_type=jnp.float32)                     # (TM, Din)

    # NodeApply: Linear(cat(h, agg)) == h @ W_self + agg @ W_agg + b
    z = (jnp.dot(hrow_ref[...], w_self_ref[...],
                 preferred_element_type=jnp.float32)
         + jnp.dot(agg.astype(jnp.bfloat16), w_agg_ref[...],
                   preferred_element_type=jnp.float32)
         + b_ref[...])

    # F.normalize(p=2, dim=1): z / max(||z||, eps) == z * rsqrt(max(||z||^2, eps^2))
    ssq = jnp.sum(z * z, axis=1, keepdims=True)
    z = z * jax.lax.rsqrt(jnp.maximum(ssq, _L2_EPS * _L2_EPS))

    # ReLU
    z = jnp.maximum(z, 0.0)
    z_ref[...] = z

    # BatchNorm1d batch statistics, accumulated across row tiles in resident outputs.
    @pl.when(i == 0)
    def _():
        scale_ref[...] = jnp.zeros_like(scale_ref)
        shift_ref[...] = jnp.zeros_like(shift_ref)

    scale_ref[...] += jnp.sum(z, axis=0, keepdims=True)         # running sum
    shift_ref[...] += jnp.sum(z * z, axis=0, keepdims=True)     # running sum of squares

    @pl.when(i == last)
    def _():
        inv_n = 1.0 / n_nodes
        mean = scale_ref[...] * inv_n
        var = jnp.maximum(shift_ref[...] * inv_n - mean * mean, 0.0)   # biased variance
        inv_std = jax.lax.rsqrt(var + _BN_EPS)
        scl = gamma_ref[...] * inv_std
        scale_ref[...] = scl
        shift_ref[...] = beta_ref[...] - mean * scl


def _sage_pass2_kernel(z_ref, scale_ref, shift_ref, out_ref):
    """Pass 2: apply the finalized BatchNorm affine (pure elementwise, fully parallel)."""
    out_ref[...] = (z_ref[...] * scale_ref[...] + shift_ref[...]).astype(out_ref.dtype)


def _readout_kernel(member_ref, h_ref, w_ref, out_ref):
    """dgl.mean_nodes (via pre-normalized membership matrix) fused with readout_mlp."""
    hg = jnp.dot(member_ref[...], h_ref[...].astype(jnp.float32),
                 preferred_element_type=jnp.float32)                     # (G, Dp)
    out_ref[...] = jnp.dot(hg, w_ref[...], preferred_element_type=jnp.float32)


# ------------------------------ JAX wrappers ----------------------------------

def embed(x, w, b, tm):
    n, dp_in = x.shape
    dp_out = w.shape[1]
    return pl.pallas_call(
        _embed_kernel,
        grid=(n // tm,),
        in_specs=[pl.BlockSpec((tm, dp_in), lambda i: (i, 0)),
                  pl.BlockSpec((dp_in, dp_out), lambda i: (0, 0)),
                  pl.BlockSpec((1, dp_out), lambda i: (0, 0))],
        out_specs=pl.BlockSpec((tm, dp_out), lambda i: (i, 0)),
        out_shape=jax.ShapeDtypeStruct((n, dp_out), jnp.bfloat16),
        compiler_params=pltpu.CompilerParams(dimension_semantics=("parallel",)),
    )(x, w, b)


def sage_pass1(adj_norm, h, lp, tm):
    n, dp_in = h.shape
    dp_out = lp["w_self"].shape[1]
    kernel = functools.partial(_sage_pass1_kernel, n_nodes=float(n))
    return pl.pallas_call(
        kernel,
        grid=(n // tm,),
        in_specs=[pl.BlockSpec((tm, n), lambda i: (i, 0)),         # adj rows of this tile
                  pl.BlockSpec((n, dp_in), lambda i: (0, 0)),      # all node feats (resident)
                  pl.BlockSpec((tm, dp_in), lambda i: (i, 0)),     # this tile's feats
                  pl.BlockSpec((dp_in, dp_out), lambda i: (0, 0)),
                  pl.BlockSpec((dp_in, dp_out), lambda i: (0, 0)),
                  pl.BlockSpec((1, dp_out), lambda i: (0, 0)),
                  pl.BlockSpec((1, dp_out), lambda i: (0, 0)),
                  pl.BlockSpec((1, dp_out), lambda i: (0, 0))],
        out_specs=(pl.BlockSpec((tm, dp_out), lambda i: (i, 0)),   # pre-BN activations
                   pl.BlockSpec((1, dp_out), lambda i: (0, 0)),    # BN scale (accumulator)
                   pl.BlockSpec((1, dp_out), lambda i: (0, 0))),   # BN shift (accumulator)
        out_shape=(jax.ShapeDtypeStruct((n, dp_out), jnp.float32),
                   jax.ShapeDtypeStruct((1, dp_out), jnp.float32),
                   jax.ShapeDtypeStruct((1, dp_out), jnp.float32)),
        compiler_params=pltpu.CompilerParams(dimension_semantics=("arbitrary",)),
    )(adj_norm, h, h, lp["w_self"], lp["w_agg"], lp["b"], lp["gamma"], lp["beta"])


def sage_pass2(z, scale, shift, tm):
    n, dp = z.shape
    return pl.pallas_call(
        _sage_pass2_kernel,
        grid=(n // tm,),
        in_specs=[pl.BlockSpec((tm, dp), lambda i: (i, 0)),
                  pl.BlockSpec((1, dp), lambda i: (0, 0)),
                  pl.BlockSpec((1, dp), lambda i: (0, 0))],
        out_specs=pl.BlockSpec((tm, dp), lambda i: (i, 0)),
        out_shape=jax.ShapeDtypeStruct((n, dp), jnp.bfloat16),
        compiler_params=pltpu.CompilerParams(dimension_semantics=("parallel",)),
    )(z, scale, shift)


def readout_logits(member_norm, h, w_readout):
    g = member_norm.shape[0]
    cp = w_readout.shape[1]
    return pl.pallas_call(
        _readout_kernel,
        out_shape=jax.ShapeDtypeStruct((g, cp), jnp.float32),
        in_specs=[_VMEM, _VMEM, _VMEM],
        out_specs=_VMEM,
    )(member_norm, h, w_readout)


def init_params(key, in_dim, hidden_dims, n_classes):
    """Parameters mirroring the PyTorch inits, zero-padded to lane-dense (128) dims."""
    dp_in = _round_up(in_dim, _LANE)
    params = {"in_dim": in_dim, "dp_in": dp_in, "n_classes": n_classes}

    # embedding_h = nn.Linear(in_dim, in_dim)
    key, kw, kb = jax.random.split(key, 3)
    bound = 1.0 / np.sqrt(in_dim)
    w_emb = jax.random.uniform(kw, (in_dim, in_dim), jnp.float32, -bound, bound)
    b_emb = jax.random.uniform(kb, (1, in_dim), jnp.float32, -bound, bound)
    params["emb_w"] = _pad2(w_emb.T, dp_in, dp_in).astype(jnp.bfloat16)
    params["emb_b"] = _pad2(b_emb, 1, dp_in)

    layers = []
    d_in, dp_prev = in_dim, dp_in
    for d_out in hidden_dims:
        dp_out = _round_up(d_out, _LANE)
        key, kw, kb = jax.random.split(key, 3)
        bound = 1.0 / np.sqrt(2 * d_in)
        w_t = jax.random.uniform(kw, (2 * d_in, d_out), jnp.float32, -bound, bound)
        b = jax.random.uniform(kb, (1, d_out), jnp.float32, -bound, bound)
        layers.append(dict(
            w_self=_pad2(w_t[:d_in, :], dp_prev, dp_out).astype(jnp.bfloat16),
            w_agg=_pad2(w_t[d_in:, :], dp_prev, dp_out).astype(jnp.bfloat16),
            b=_pad2(b, 1, dp_out),
            gamma=jnp.ones((1, dp_out), jnp.float32),
            beta=jnp.zeros((1, dp_out), jnp.float32),
        ))
        d_in, dp_prev = d_out, dp_out
    params["layers"] = layers

    # readout_mlp = nn.Linear(hidden[-1], n_classes, bias=False)
    key, kw = jax.random.split(key)
    bound = 1.0 / np.sqrt(d_in)
    w_r = jax.random.uniform(kw, (n_classes, d_in), jnp.float32, -bound, bound)
    params["readout_w"] = _pad2(w_r.T, dp_prev, _round_up(n_classes, _LANE))
    return params


def graphsage_net2_forward(adj, member, nodes_feat, params, *, row_tile=256,
                           edges_feat=None, nodes_num_norm_sqrt=None,
                           edges_num_norm_sqrt=None):
    # edges_feat / *_num_norm_sqrt accepted but unused (matches the meanpool forward).
    n = nodes_feat.shape[0]
    tm = _pick_row_tile(n, row_tile)

    # Graph-structure preprocessing done ONCE, reused by every layer / the readout:
    # row-normalized adjacency (mean aggregation) in bf16, count-normalized membership.
    deg = jnp.sum(adj, axis=1, keepdims=True)
    adj_norm = (adj * jnp.where(deg > 0.0, 1.0 / jnp.maximum(deg, 1.0), 0.0)
                ).astype(jnp.bfloat16)
    cnt = jnp.sum(member, axis=1, keepdims=True)
    member_norm = member / jnp.maximum(cnt, 1.0)

    x = _pad2(nodes_feat, n, params["dp_in"])            # lane-dense feature padding
    h = embed(x, params["emb_w"], params["emb_b"], tm)
    for lp in params["layers"]:
        z, scale, shift = sage_pass1(adj_norm, h, lp, tm)
        h = sage_pass2(z, scale, shift, tm)
    logits = readout_logits(member_norm, h, params["readout_w"])
    return logits[:, :params["n_classes"]]


# ---------------------------------- main --------------------------------------

if __name__ == "__main__":
    # Small synthetic batch: 2 graphs x 32 nodes, bidirectional ring topology each.
    num_graphs = 2
    nodes_per_graph = 32
    n_nodes = num_graphs * nodes_per_graph          # 64
    in_dim = 16
    hidden_dims = [32, 32]
    n_classes = 10

    adj_np = np.zeros((n_nodes, n_nodes), dtype=np.float32)       # adj[dst, src]
    member_np = np.zeros((num_graphs, n_nodes), dtype=np.float32)
    for g in range(num_graphs):
        base = g * nodes_per_graph
        member_np[g, base:base + nodes_per_graph] = 1.0
        for i in range(nodes_per_graph):
            src = base + i
            nxt = base + (i + 1) % nodes_per_graph
            adj_np[nxt, src] = 1.0
            adj_np[src, nxt] = 1.0
    adj = jnp.asarray(adj_np)
    member = jnp.asarray(member_np)

    key = jax.random.PRNGKey(0)
    key, kx = jax.random.split(key)
    nodes_feat = jax.random.normal(kx, (n_nodes, in_dim), jnp.float32)

    params = init_params(key, in_dim, hidden_dims, n_classes)

    # row_tile=16 -> 4 row tiles per layer, exercising the tiled/accumulating path.
    logits = graphsage_net2_forward(adj, member, nodes_feat, params, row_tile=16)
    logits = jax.block_until_ready(logits)
    assert logits.shape == (num_graphs, n_classes)
    assert bool(jnp.all(jnp.isfinite(logits)))
    print("KERNEL_OK")
</pallas_src>

<mosaic_0001>
module attributes {stable_mosaic.version = 11 : i64} {
  func.func @_embed_kernel(%arg0: i32, %arg1: memref<16x128xf32, #tpu.memory_space<vmem>>, %arg2: memref<128x128xbf16, #tpu.memory_space<vmem>>, %arg3: memref<1x128xf32, #tpu.memory_space<vmem>>, %arg4: memref<16x128xbf16, #tpu.memory_space<vmem>>) attributes {dimension_semantics = [#tpu.dimension_semantics<parallel>], iteration_bounds = array<i64: 4>, scalar_prefetch = 0 : i64, scratch_operands = 0 : i64, tpu.core_type = #tpu.core_type<tc>, window_params = [{transform_indices = @transform_0, window_bounds = array<i64: 16, 128>}, {pipeline_mode = #tpu.pipeline_mode<synchronous>, transform_indices = @transform_1, window_bounds = array<i64: 128, 128>}, {pipeline_mode = #tpu.pipeline_mode<synchronous>, transform_indices = @transform_2, window_bounds = array<i64: 1, 128>}, {transform_indices = @transform_3, window_bounds = array<i64: 16, 128>}]} {
    %c0 = arith.constant 0 : index
    %c0_0 = arith.constant 0 : index
    %0 = vector.load %arg1[%c0, %c0_0] : memref<16x128xf32, #tpu.memory_space<vmem>>, vector<16x128xf32>
    %1 = arith.truncf %0 : vector<16x128xf32> to vector<16x128xbf16>
    %c0_1 = arith.constant 0 : index
    %c0_2 = arith.constant 0 : index
    %2 = vector.load %arg2[%c0_1, %c0_2] : memref<128x128xbf16, #tpu.memory_space<vmem>>, vector<128x128xbf16>
    %cst = arith.constant dense<0.000000e+00> : vector<16x128xf32>
    %3 = tpu.matmul %1, %2, %cst {dimension_numbers = #tpu.dot_dimension_numbers<[1], [0], [0], [1], [0, 0, 1, 1], [], []>} : vector<16x128xbf16>, vector<128x128xbf16>, vector<16x128xf32> -> vector<16x128xf32>
    %c0_3 = arith.constant 0 : index
    %c0_4 = arith.constant 0 : index
    %4 = vector.load %arg3[%c0_3, %c0_4] : memref<1x128xf32, #tpu.memory_space<vmem>>, vector<1x128xf32>
    %5 = vector.broadcast %4 : vector<1x128xf32> to vector<16x128xf32>
    %6 = arith.addf %3, %5 : vector<16x128xf32>
    %7 = arith.truncf %6 : vector<16x128xf32> to vector<16x128xbf16>
    %c0_5 = arith.constant 0 : index
    %c0_6 = arith.constant 0 : index
    %8 = vector.load %arg4[%c0_5, %c0_6] : memref<16x128xbf16, #tpu.memory_space<vmem>>, vector<16x128xbf16>
    tpu.vector_store %arg4[%c0_5, %c0_6], %7 {strides = array<i32>} : memref<16x128xbf16, #tpu.memory_space<vmem>>, vector<16x128xbf16>,
    return
  }
  func.func @transform_0(%arg0: i32) -> (i32, i32) {
    %c0_i32 = arith.constant 0 : i32
    %c0_i32_0 = arith.constant 0 : i32
    return %arg0, %c0_i32 : i32, i32
  }
  func.func @transform_1(%arg0: i32) -> (i32, i32) {
    %c0_i32 = arith.constant 0 : i32
    %c0_i32_0 = arith.constant 0 : i32
    %c0_i32_1 = arith.constant 0 : i32
    return %c0_i32, %c0_i32_0 : i32, i32
  }
  func.func @transform_2(%arg0: i32) -> (i32, i32) {
    %c0_i32 = arith.constant 0 : i32
    %c0_i32_0 = arith.constant 0 : i32
    %c0_i32_1 = arith.constant 0 : i32
    return %c0_i32, %c0_i32_0 : i32, i32
  }
  func.func @transform_3(%arg0: i32) -> (i32, i32) {
    %c0_i32 = arith.constant 0 : i32
    %c0_i32_0 = arith.constant 0 : i32
    return %arg0, %c0_i32 : i32, i32
  }
}

</mosaic_0001>

<bundles_post_ra>
// kernel: tpu_custom_call.1
= control target key start
LH: loop header
LB: loop body
LE: loop exit
PB: predicated region body
PF: predicated region fallthrough
CT: control target
= control target key end

     0   :  { %8 = vsyncpa [#allocation3], 0  ;;  %s928_s0 = inlined_call_operand.hbm [shape: f32[64,128], index: 0, kind: input, shape index: {}]   ;;  %s929_s1 = inlined_call_operand.hbm [shape: bf16[128,128], index: 1, kind: input, shape index: {}]   ;;  %s930_s2 = inlined_call_operand.vmem [shape: f32[1,128], index: 2, kind: input, shape index: {}]   ;;  %s931_s3 = inlined_call_operand.hbm [shape: bf16[64,128], index: 3, kind: output, shape index: {}]  }
   0x1   :  { %10 = vsyncpa [#allocation3 + $0x1], 0 }
   0x2   :  { %11 = vsyncpa [#allocation6], 0 }
   0x3   :  { %12 = vsyncpa [#allocation4], 0 }
   0x4   :  { %14 = vsyncpa [#allocation4 + $0x1], 0  ;;  %s728_s12 = smov 0   ;;  %s730_s13 = smov 0  }
   0x5   :  { %s732_s14 = smov 0   ;;  %s734_s15 = smov 0  }
   0x6 LB: > { %s749_s16 = sadd.s32 4294967295, %s695_s15   ;;  %s429_s17 = sadd.s32 4294967294, %s695_s15   ;;  %s695_s15 = sphi %s734_s15, %s950_s15   ;;  %s691_s14 = sphi %s732_s14, %s949_s14   ;;  %s687_s13 = sphi %s730_s13, %s948_s13   ;;  %s683_s12 = sphi %s728_s12, %s947_s12  }
   0x7   : > { %p40_p0 = scmp.ne.s32.totalorder %s687_s13, %s683_s12  ;;  %p932_p1 = scmp.eq.s32.totalorder %s749_s16, 0 }
   0x8   : > { %p112_p3 = scmp.eq.s32.totalorder %s429_s17, 3  ;;  %p430_p5 = scmp.ge.s32.totalorder %s695_s15, 1 }
   0x9   : > { %p758_p4 = por %p932_p1, %p40_p0  ;;  %p119_p7 = scmp.lt.s32.totalorder %s695_s15, 5 }
   0xa   : > { %p763_p6 = por %p112_p3, %p40_p0  ;;  %s697_s21 = smov [#allocation5]  }
   0xb   : > { %s935_s18 = scalar_select %p758_p4, 1, 0 }
   0xc   : > { %s936_s19 = scalar_select %p763_p6, 1, 0 }
   0xd   : > { %p768_p8 = pnand %p430_p5, %p119_p7  ;;  %s131_s22 = sshll.u32 %s697_s21, 4  ;;  %s132_s22 = int_to_ptr.vmem [resolvable:$true] %s131_s22 }
   0xe   : > { %s781_s24 = sadd.s32 1, %s695_s15   ;;  %s27_s25 = sadd.s32 1, %s691_s14 }
   0xf   : > { %s937_s20 = scalar_select %p768_p8, 1, 0 }
  0x10   : > { %p502_p9 = pneg %p768_p8  ;;  %s24_s26 = ssub.s32 %s695_s15, %s781_s24 }
  0x11   : > { %s567_s29 = scalar_lea.hbm %s929_s1, 1024 }
  0x12   : > { %p776_p10 = pnand %p502_p9, %p932_p1  ;;  %p568_p11 = scmp.ne.s32.totalorder %s929_s1, %s567_s29 }
  0x13   : > { %p574_p3 = scmp.lt.u32.totalorder %s567_s29, %s929_s1 }
  0x14   : > { %p569_p12 = pneg %p776_p10 }
  0x16   : > { %p570_p13 = pnand %p569_p12, %p568_p11 }
  0x18   : > { %p571_p0 = pneg %p570_p13 }
  0x1a   : > { %p576_p5 = pnand %p574_p3, %p571_p0 }
  0x1c   : > { %579 = shalt.err (!%p576_p5)
}
  0x1d   : > { %s580_s7 = scalar_lea.vmem %s132_s22, 1024  ;;  %p588_p2 = scmp.lt.s32.totalorder %s132_s22, %s132_s22 }
  0x1e   : > { %p581_p7 = scmp.ne.s32.totalorder %s132_s22, %s580_s7  ;;  %p589_p6 = scmp.lt.s32.totalorder %s580_s7, %s580_s7 }
  0x20   : > { %p583_p9 = pnand %p581_p7, %p569_p12  ;;  %p590_p4 = por %p589_p6, %p588_p2 }
  0x22   : > { %p584_p1 = pneg %p583_p9 }
  0x24   : > { %p591_p8 = pnand %p590_p4, %p584_p1 }
  0x26   : > { %594 = shalt.err (!%p591_p8)
}
  0x27   : > { %s698_s8 = smov 64   ;;  %s699_s9 = smov 4  }
  0x28   : > { %505 = dma.hbm_to_vmem [thread:$0]  (!%p776_p10), %s929_s1, 1024, %s132_s22, [#allocation6], %s698_s8, %s698_s8, %s699_s9  }
  0x29   : > { %p25_p11 = scmp.eq.s32.totalorder %s24_s26, 0  ;;  %p34_p2 = scmp.ne.s32.totalorder %s691_s14, %s687_s13 }
  0x2a   : > { %p35_p1 = scmp.eq.s32.totalorder %s695_s15, 0  ;;  %p515_p4 = scmp.lt.s32.totalorder %s695_s15, 4 }
  0x2b   : > { %s807_s17 = scalar_select %p25_p11, %s691_s14, %s27_s25  }
  0x2c   : > { %p36_p6 = por %p35_p1, %p34_p2  ;;  %p939_p8 = scmp.eq.s32.totalorder %s749_s16, 3 }
  0x2d   : > { %s148_s27 = sand.u32 1, %s691_s14   ;;  %s456_s28 = sshll.u32 %s695_s15, 8 }
  0x2e   : > { %p811_p12 = por %p939_p8, %p34_p2  ;;  %s433_s29 = sshll.u32 %s148_s27, 4 }
  0x2f   : > { %s820_s4 = scalar_lea.hbm %s928_s0, %s456_s28  ;;  %s152_s22 = scalar_lea.vmem [#allocation2], %s433_s29 }
  0x30   : > { %s159_s25 = sshll.u32 %s152_s22, 4  ;;  %p822_p10 = pnand %p515_p4, %p36_p6  ;;  %s826_s25 = int_to_ptr.vmem [resolvable:$true] %s159_s25 }
  0x31   : > { %s828_s5 = scalar_lea.sflag [#allocation3], %s148_s27  ;;  %s595_s6 = scalar_lea.hbm %s820_s4, 256 }
  0x32   : > { %p596_p13 = scmp.ne.s32.totalorder %s820_s4, %s595_s6  ;;  %p597_p0 = pneg %p822_p10 }
  0x33   : > { %s600_s9 = scalar_lea.hbm %s928_s0, 1024  ;;  %p601_p7 = scmp.lt.u32.totalorder %s820_s4, %s928_s0 }
  0x34   : > { %p598_p3 = pnand %p597_p0, %p596_p13  ;;  %p602_p9 = scmp.lt.u32.totalorder %s600_s9, %s595_s6 }
  0x35   : > { %p604_p2 = scmp.lt.u32.totalorder %s595_s6, %s820_s4 }
  0x36   : > { %p599_p5 = pneg %p598_p3  ;;  %p603_p11 = por %p602_p9, %p601_p7 }
  0x38   : > { %p605_p1 = por %p604_p2, %p603_p11 }
  0x3a   : > { %p606_p4 = pnand %p605_p1, %p599_p5 }
  0x3c   : > { %609 = shalt.err (!%p606_p4)
}
  0x3d   : > { %s610_s27 = scalar_lea.vmem %s826_s25, 256  ;;  %s700_s28 = smov [#allocation2]  }
  0x3e   : > { %p611_p6 = scmp.ne.s32.totalorder %s826_s25, %s610_s27  ;;  %s615_s29 = sshll.u32 %s700_s28, 4  ;;  %s616_s29 = int_to_ptr.vmem [resolvable:$false] %s615_s29 }
  0x3f   : > { %s617_s23 = scalar_lea.vmem %s616_s29, 512  ;;  %p618_p3 = scmp.lt.s32.totalorder %s826_s25, %s616_s29 }
  0x40   : > { %p613_p8 = pnand %p611_p6, %p597_p0  ;;  %p619_p7 = scmp.lt.s32.totalorder %s617_s23, %s610_s27 }
  0x42   : > { %p614_p13 = pneg %p613_p8  ;;  %p620_p9 = por %p619_p7, %p618_p3 }
  0x44   : > { %p621_p11 = pnand %p620_p9, %p614_p13 }
  0x46   : > { %624 = shalt.err (!%p621_p11)
}
  0x47   : > { %s701_s30 = smov 128   ;;  %s702_s22 = smov 8  }
  0x48   : > { %509 = dma.hbm_to_vmem [thread:$0]  (!%p822_p10), %s820_s4, 256, %s826_s25, %s828_s5, %s701_s30, %s701_s30, %s702_s22  }
  0x49   : > { %p942_p0 = scmp.ne.s32.totalorder %s937_s20, 0 }
  0x4a   : > { %s859_s6 = sand.u32 (!%p942_p0), 1, %s687_s13   ;;  %p943_p5 = scmp.ne.s32.totalorder (!%p942_p0), %s935_s18, 0 }
  0x4b   : > { %171 = sbr.rel (%p942_p0) target bundleno = 352 (0x160), region = 32  ;;  %s437_s7 = sshll.u32 (!%p942_p0), %s859_s6, 4 }
  0x4c   : > { %s174_s8 = scalar_lea.sflag (!%p942_p0), [#allocation3], %s859_s6  ;;  %s863_s9 = scalar_lea.vmem (!%p942_p0), [#allocation2], %s437_s7 }
  0x52   : > { %670 = dma.done.wait (%p943_p5), %s174_s8, 256  }
  0x53   : > { %672 = vsyncadd (%p943_p5), %s174_s8, 4294967040  ;;  %p944_p10 = scmp.eq.s32.totalorder %s749_s16, 0 }
  0x55   : > { %674 = dma.done.wait (%p944_p10), [#allocation6], 1024   ;;  %p945_p2 = pmov %p944_p10 }
  0x56   : > { %v703_v0 = vmov 0.0   ;;  %vm704_vm0 = vmmov 0   ;;  %v559_v1 = vld [vmem:[#allocation5] sm:$0xff]   ;;  %v560_v2 = vld [vmem:[#allocation5 + $0x8] sm:$0xff]   ;;  %v561_v3 = vld [vmem:[#allocation5 + $0x10] sm:$0xff]   ;;  %s439_s18 = sshll.u32 %s859_s6, 3 }
  0x57   : > { %676 = vsyncadd (%p945_p2), [#allocation6], 4294966272  ;;  %474 = vmatprep.subr.bf16.mxu0 %v703_v0  ;;  %490 = vmatprep.mubr.msk.bf16.mxu0 %vm704_vm0, %v703_v0  ;;  %v562_v4 = vld [vmem:[#allocation5 + $0x18] sm:$0xff]   ;;  %v563_v5 = vld [vmem:[#allocation5 + $0x20] sm:$0xff]   ;;  %s203_s25 = scalar_lea.vmem [#allocation7], %s439_s18  ;;  %s459_s5 = sshll.u32 %s749_s16, 7 }
  0x58   : > { %475 = vmatpush3.bf16.msra.mxu0 %v559_v1  ;;  %v564_v6 = vld [vmem:[#allocation5 + $0x28] sm:$0xff]   ;;  %v565_v7 = vld [vmem:[#allocation5 + $0x30] sm:$0xff]   ;;  %v566_v8 = vld [vmem:[#allocation5 + $0x38] sm:$0xff]   ;;  %s346_s26 = sshll.u32 %s203_s25, 4  ;;  %s885_s27 = scalar_lea.hbm %s931_s3, %s459_s5  ;;  %s880_s26 = int_to_ptr.vmem [resolvable:$true] %s346_s26 }
  0x59   : > { %476 = vmatprep.subr.bf16.mxu0 %v703_v0  ;;  %v207_v9 = vld [vmem:[%s863_s9] sm:$0xff]  ;;  %v208_v10 = vld [vmem:[%s863_s9 + $0x8] sm:$0xff]  ;;  %s333_s28 = scalar_lea.sflag [#allocation4], %s859_s6  ;;  %s625_s29 = scalar_lea.vmem %s880_s26, 128 }
  0x5a   : > { %v209_v11 = vpack.c.bf16 %v208_v10, %v207_v9  ;;  %v440_v12 = vld [vmem:[%s930_s2] ss:$0 sm:$0xff]  ;;  %p626_p1 = scmp.ne.s32.totalorder %s880_s26, %s625_s29  ;;  %s705_s16 = smov [#allocation7]  }
  0x5b   : > { %s629_s23 = sshll.u32 %s705_s16, 4  ;;  %s630_s23 = int_to_ptr.vmem [resolvable:$false] %s629_s23 }
  0x5c   : > { %477 = vmatpush3.bf16.msra.mxu0 %v560_v2  ;;  %p627_p4 = pnand %p626_p1, %p811_p12  ;;  %s631_s30 = scalar_lea.vmem %s630_s23, 256 }
  0x5d   : > { %478 = vmatprep.subr.bf16.mxu0 %v703_v0  ;;  %p632_p8 = scmp.lt.s32.totalorder %s880_s26, %s630_s23  ;;  %p633_p13 = scmp.lt.s32.totalorder %s631_s30, %s625_s29 }
  0x5e   : > { %p628_p6 = pneg %p627_p4 }
  0x5f   : > { %p634_p3 = por %p633_p13, %p632_p8 }
  0x60   : > { %479 = vmatpush3.bf16.msra.mxu0 %v561_v3 }
  0x61   : > { %480 = vmatprep.subr.bf16.mxu0 %v703_v0  ;;  %p635_p7 = pnand %p634_p3, %p628_p6 }
  0x64   : > { %481 = vmatpush3.bf16.msra.mxu0 %v562_v4 }
  0x65   : > { %482 = vmatprep.subr.bf16.mxu0 %v703_v0 }
  0x68   : > { %483 = vmatpush3.bf16.msra.mxu0 %v563_v5 }
  0x69   : > { %484 = vmatprep.subr.bf16.mxu0 %v703_v0 }
  0x6c   : > { %485 = vmatpush3.bf16.msra.mxu0 %v564_v6 }
  0x6d   : > { %486 = vmatprep.subr.bf16.mxu0 %v703_v0 }
  0x70   : > { %487 = vmatpush3.bf16.msra.mxu0 %v565_v7 }
  0x71   : > { %488 = vmatprep.subr.bf16.mxu0 %v703_v0 }
  0x74   : > { %489 = vmatpush3.bf16.msra.mxu0 %v566_v8 }
  0x77   : > { %491 = vmatmul.mubr.bf16.vlgmr.msra.gmra.mrb[0].mxu0 %v209_v11 }
 0x14a   : > { %v315_v13 = vpop.f32.mrb[0].mxu0 }
 0x14b   : > { %v492_v14 = vpop.f32.mrb[1].mxu0  ;;  %v316_v16 = vadd.f32 %v440_v12, %v315_v13 }
 0x14c   : > { %v318_v15 = vpop.f32.mrb[2].mxu0 }
 0x14d   : > { %v319_v17 = vadd.f32 %v440_v12, %v318_v15  ;;  %v493_v18 = vpop.f32.mrb[3].mxu0 }
 0x14f   : > { %v463_v19 = vpack.c.bf16 %v319_v17, %v316_v16 }
 0x151   : > { %464 = vst [vmem:[%s203_s25] sm:$0xff] %v463_v19  }
 0x152   : > { %638 = shalt.err (!%p635_p7)
}
 0x153   : > { %s639_s22 = scalar_lea.hbm %s885_s27, 128  ;;  %s643_s9 = scalar_lea.hbm %s931_s3, 512 }
 0x154   : > { %p640_p9 = scmp.ne.s32.totalorder %s885_s27, %s639_s22  ;;  %p644_p5 = scmp.lt.u32.totalorder %s885_s27, %s931_s3 }
 0x155   : > { %p645_p10 = scmp.lt.u32.totalorder %s643_s9, %s639_s22  ;;  %p647_p1 = scmp.lt.u32.totalorder %s639_s22, %s885_s27 }
 0x156   : > { %p641_p11 = pnand %p640_p9, %p811_p12 }
 0x157   : > { %p646_p2 = por %p645_p10, %p644_p5 }
 0x158   : > { %p642_p0 = pneg %p641_p11 }
 0x159   : > { %p648_p4 = por %p647_p1, %p646_p2 }
 0x15b   : > { %p649_p6 = pnand %p648_p4, %p642_p0 }
 0x15d   : > { %652 = shalt.err (!%p649_p6)
}
 0x15e   : > { %s706_s4 = smov 64   ;;  %s707_s25 = smov 4  }
 0x15f   : > { %500 = dma.vmem_to_hbm [thread:$0]  (%p811_p12), %s880_s26, 128, %s885_s27, %s333_s28, %s706_s4, %s706_s4, %s707_s25  }
 0x160 PF: > { %p517_p8 = scmp.ge.s32.totalorder %s695_s15, 2  ;;  %s361_s5 = sand.u32 1, %s683_s12  }
 0x161   : > { %p946_p13 = scmp.ne.s32.totalorder %s936_s19, 0  ;;  %s362_s10 = scalar_lea.sflag [#allocation4], %s361_s5 }
 0x163   : > { %p511_p3 = pnand %p517_p8, %p946_p13 }
 0x165   : > { %678 = dma.done.wait (!%p511_p3), %s362_s10, 128  }
 0x166   : > { %680 = vsyncadd (!%p511_p3), %s362_s10, 4294967168  ;;  %p17_p7 = scmp.ge.s32.totalorder %s781_s24, 6   ;;  %s947_s12 = smov %s687_s13 }
 0x167   : > { %s948_s13 = smov %s691_s14  ;;  %s949_s14 = smov %s807_s17 }
 0x168   : > { %s950_s15 = smov %s781_s24  ;;  %19 = sbr.rel (!%p17_p7) target bundleno = 6 (0x6), region = 81 }
 0x16f   :  { %367 = vsyncpa [#allocation3], 1 }
 0x170   :  { %369 = vsyncpa [#allocation3 + $0x1], 1 }
 0x171   :  { %370 = vsyncpa [#allocation6], 1 }
 0x172   :  { %371 = vsyncpa [#allocation4], 1 }
 0x173   :  { %373 = vsyncpa [#allocation4 + $0x1], 1 }

</bundles_post_ra>
